<compile_context>
chip_gen: v5e
topology: v5e:2x2
jax: 0.10.0
libtpu: 0.0.40
codegen_flags: <defaults>
</compile_context>

<pallas_src>
import jax
import jax.numpy as jnp
from jax.experimental import pallas as pl
from jax.experimental.pallas import tpu as pltpu


def _round_up(x, m):
    return ((x + m - 1) // m) * m


def _vmem_capacity_bytes():
    """Physical VMEM per core; conservative 64 MiB fallback (safe on every generation)."""
    try:
        info = pltpu.get_tpu_info()
        for attr in ("vmem_capacity_bytes", "vmem_bytes", "vmem_capacity"):
            v = getattr(info, attr, None)
            if isinstance(v, int) and v > 0:
                return v
    except Exception:
        pass
    return 64 << 20


def _vmem_est(tm, th, d_pad, chunked):
    """Rough per-step VMEM footprint (bytes) used to size tiles against the budget."""
    io = 2 * 2 * tm * d_pad * 4            # x + out tiles, f32, double-buffered
    w = 2 * 2 * d_pad * th * 2             # W1 + W2 (chunk or full), bf16, 2 buffers each
    vec = 2 * (3 * d_pad + th) * 4         # gamma / beta / b2 + b1 chunk
    tmp = 2 * tm * th * 4                  # hidden intermediate temps (f32)
    if chunked:
        scr = tm * d_pad * (2 + 4)         # xn (bf16) + acc (f32) scratch
    else:
        scr = tm * d_pad * 4               # compiler temp for the LN output
    return io + w + vec + tmp + scr + (2 << 20)


def _select_tm(n_tokens, d_pad, th, chunked, vmem_budget):
    """Largest token tile (multiple of 8, <= 1024) that fits the VMEM budget."""
    n8 = max(8, _round_up(n_tokens, 8))
    cands = []
    for c in (1024, 768, 512, 384, 256, 192, 128, 96, 64, 32, 16, 8):
        t = max(8, min(c, n8))
        if t not in cands:
            cands.append(t)
    tm = cands[-1]
    for t in cands:
        if _vmem_est(t, th, d_pad, chunked) <= vmem_budget:
            tm = t
            break
    # v7x has 2 TensorCores sharding the "parallel" axis: give it >= 2 blocks when N is large.
    if _round_up(n_tokens, tm) // tm == 1 and n_tokens > 512:
        tm_half = max(256, _round_up((n_tokens + 1) // 2, 256))
        if tm_half < tm:
            tm = tm_half
    return tm


def _layer_norm(x, g, b, d_true, d_pad):
    """Two-pass LayerNorm in f32; padded lanes (zero in x) are masked out of the stats."""
    inv_d = 1.0 / float(d_true)
    mean = jnp.sum(x, axis=-1, keepdims=True) * inv_d
    xc = x - mean
    if d_pad > d_true:
        lane = jax.lax.broadcasted_iota(jnp.int32, x.shape, 1)
        xc_v = jnp.where(lane < d_true, xc, 0.0)
    else:
        xc_v = xc
    var = jnp.sum(xc_v * xc_v, axis=-1, keepdims=True) * inv_d   # biased var (torch default)
    return xc * jax.lax.rsqrt(var + 1e-5) * g + b                # padded lanes: g=b=0 -> 0


def _make_resident_kernel(d_true, d_pad):
    """Single fused step: full W1/W2 live in VMEM for the whole grid."""
    def kernel(x_ref, g_ref, beta_ref, w1_ref, b1_ref, w2_ref, b2_ref, o_ref):
        x = x_ref[...].astype(jnp.float32)
        xn = _layer_norm(x, g_ref[...], beta_ref[...], d_true, d_pad)
        h = jnp.dot(xn.astype(jnp.bfloat16), w1_ref[...],
                    preferred_element_type=jnp.float32)
        h = jnp.maximum(h + b1_ref[...], 0.0)
        y = jnp.dot(h.astype(jnp.bfloat16), w2_ref[...],
                    preferred_element_type=jnp.float32)
        o_ref[...] = (y + b2_ref[...] + x).astype(o_ref.dtype)
    return kernel


def _make_chunked_kernel(d_true, d_pad):
    """Hidden dim chunked over grid axis 1 (n_k >= 2): f32 accumulator in VMEM scratch."""
    def kernel(x_ref, g_ref, beta_ref, w1_ref, b1_ref, w2_ref, b2_ref, o_ref,
               xn_ref, acc_ref):
        k = pl.program_id(1)
        n_k = pl.num_programs(1)

        # Once per token tile: LayerNorm, cache bf16 result for every hidden chunk.
        @pl.when(k == 0)
        def _():
            x = x_ref[...].astype(jnp.float32)
            xn = _layer_norm(x, g_ref[...], beta_ref[...], d_true, d_pad)
            xn_ref[...] = xn.astype(jnp.bfloat16)

        h = jnp.dot(xn_ref[...], w1_ref[...], preferred_element_type=jnp.float32)
        h = jnp.maximum(h + b1_ref[...], 0.0)
        part = jnp.dot(h.astype(jnp.bfloat16), w2_ref[...],
                       preferred_element_type=jnp.float32)

        @pl.when(k == 0)
        def _():
            acc_ref[...] = part                      # no zero-fill + add

        @pl.when(jnp.logical_and(k > 0, k < n_k - 1))
        def _():
            acc_ref[...] += part

        @pl.when(k == n_k - 1)
        def _():                                     # last chunk fused into the store
            o_ref[...] = (acc_ref[...] + part + b2_ref[...]
                          + x_ref[...].astype(jnp.float32)).astype(o_ref.dtype)
    return kernel


def _token_mlp_call(x, g2, be2, w1p, b1p, w2p, b2p, *, d_true, d_pad, h_pad, th,
                    resident, vmem_budget):
    B, S, D = x.shape
    N = B * S
    chunked = not resident
    tm = _select_tm(N, d_pad, th, chunked, vmem_budget)
    N_pad = _round_up(N, tm)
    n_i = N_pad // tm

    x2 = x.reshape(N, D).astype(jnp.float32)
    if N_pad != N or d_pad != D:
        x2 = jnp.pad(x2, ((0, N_pad - N), (0, d_pad - D)))

    est = _vmem_est(tm, th, d_pad, chunked)
    vmem_limit = min(vmem_budget, max(32 << 20, int(1.5 * est)))

    if resident:
        out = pl.pallas_call(
            _make_resident_kernel(d_true, d_pad),
            out_shape=jax.ShapeDtypeStruct((N_pad, d_pad), x.dtype),
            grid_spec=pltpu.PrefetchScalarGridSpec(
                num_scalar_prefetch=0,
                grid=(n_i,),
                in_specs=[
                    pl.BlockSpec((tm, d_pad), lambda i: (i, 0)),      # x tile
                    pl.BlockSpec((1, d_pad), lambda i: (0, 0)),       # gamma
                    pl.BlockSpec((1, d_pad), lambda i: (0, 0)),       # beta
                    pl.BlockSpec((d_pad, h_pad), lambda i: (0, 0)),   # W1 (resident, 1 fetch)
                    pl.BlockSpec((1, h_pad), lambda i: (0, 0)),       # b1
                    pl.BlockSpec((h_pad, d_pad), lambda i: (0, 0)),   # W2 (resident, 1 fetch)
                    pl.BlockSpec((1, d_pad), lambda i: (0, 0)),       # b2
                ],
                out_specs=pl.BlockSpec((tm, d_pad), lambda i: (i, 0)),
            ),
            compiler_params=pltpu.CompilerParams(
                dimension_semantics=("parallel",),
                vmem_limit_bytes=vmem_limit,
            ),
        )(x2, g2, be2, w1p, b1p, w2p, b2p)
    else:
        n_k = h_pad // th
        out = pl.pallas_call(
            _make_chunked_kernel(d_true, d_pad),
            out_shape=jax.ShapeDtypeStruct((N_pad, d_pad), x.dtype),
            grid_spec=pltpu.PrefetchScalarGridSpec(
                num_scalar_prefetch=0,
                grid=(n_i, n_k),
                in_specs=[
                    pl.BlockSpec((tm, d_pad), lambda i, k: (i, 0)),   # x (resident across k)
                    pl.BlockSpec((1, d_pad), lambda i, k: (0, 0)),    # gamma
                    pl.BlockSpec((1, d_pad), lambda i, k: (0, 0)),    # beta
                    pl.BlockSpec((d_pad, th), lambda i, k: (0, k)),   # W1 hidden chunk
                    pl.BlockSpec((1, th), lambda i, k: (0, k)),       # b1 hidden chunk
                    pl.BlockSpec((th, d_pad), lambda i, k: (k, 0)),   # W2 hidden chunk
                    pl.BlockSpec((1, d_pad), lambda i, k: (0, 0)),    # b2
                ],
                out_specs=pl.BlockSpec((tm, d_pad), lambda i, k: (i, 0)),
                scratch_shapes=[
                    pltpu.VMEM((tm, d_pad), jnp.bfloat16),   # cached LayerNorm output
                    pltpu.VMEM((tm, d_pad), jnp.float32),    # f32 accumulator
                ],
            ),
            compiler_params=pltpu.CompilerParams(
                dimension_semantics=("parallel", "arbitrary"),
                vmem_limit_bytes=vmem_limit,
            ),
        )(x2, g2, be2, w1p, b1p, w2p, b2p)

    return out[:N, :D].reshape(B, S, D)


def make_token_mlp(gamma, beta, w1, b1, w2, b2):
    """Pads + bf16-casts parameters once (call-invariant) and returns a jitted apply(x)."""
    D = int(gamma.shape[0])
    H = int(w1.shape[1])
    D_pad = _round_up(D, 128)
    H_pad0 = _round_up(H, 128)

    vmem_budget = int(0.85 * _vmem_capacity_bytes())

    # Weight residency decision (independent of batch/seq).
    resident = _vmem_est(256, H_pad0, D_pad, chunked=False) <= vmem_budget
    if resident:
        th = H_pad0
        H_pad = H_pad0
    else:
        th = 512
        if _vmem_est(256, th, D_pad, chunked=True) > vmem_budget:
            th = 256
        # Chunked kernel assumes >= 2 hidden chunks.
        th = min(th, max(128, (H_pad0 // 2) // 128 * 128))
        H_pad = _round_up(H_pad0, th)
        if H_pad // th < 2:          # degenerate tiny hidden dim -> weights trivially fit
            resident = True
            th = H_pad0
            H_pad = H_pad0

    # One-time parameter preprocessing (zero padding contributes exactly zero to the result).
    g2 = jnp.pad(gamma.astype(jnp.float32), (0, D_pad - D)).reshape(1, D_pad)
    be2 = jnp.pad(beta.astype(jnp.float32), (0, D_pad - D)).reshape(1, D_pad)
    w1p = jnp.pad(w1.astype(jnp.float32),
                  ((0, D_pad - D), (0, H_pad - H))).astype(jnp.bfloat16)
    b1p = jnp.pad(b1.astype(jnp.float32), (0, H_pad - H)).reshape(1, H_pad)
    w2p = jnp.pad(w2.astype(jnp.float32),
                  ((0, H_pad - H), (0, D_pad - D))).astype(jnp.bfloat16)
    b2p = jnp.pad(b2.astype(jnp.float32), (0, D_pad - D)).reshape(1, D_pad)

    def apply(x):
        return _token_mlp_call(x, g2, be2, w1p, b1p, w2p, b2p,
                               d_true=D, d_pad=D_pad, h_pad=H_pad, th=th,
                               resident=resident, vmem_budget=vmem_budget)

    return jax.jit(apply)


def token_mlp(x, gamma, beta, w1, b1, w2, b2):
    """Convenience one-shot wrapper (prefer make_token_mlp for repeated calls)."""
    return make_token_mlp(gamma, beta, w1, b1, w2, b2)(x)


def reference_token_mlp(x, gamma, beta, w1, b1, w2, b2):
    mean = jnp.mean(x, axis=-1, keepdims=True)
    var = jnp.mean((x - mean) ** 2, axis=-1, keepdims=True)
    xn = (x - mean) / jnp.sqrt(var + 1e-5) * gamma + beta
    h = jnp.maximum(xn @ w1 + b1, 0.0)
    y = h @ w2 + b2
    return y + x


if __name__ == "__main__":
    # Small shapes implied by the module: (batch, seq, embedding_dim)
    B, S, D = 2, 8, 32
    H = 4 * D

    key = jax.random.PRNGKey(0)
    kx, k1, k2, kb1, kb2 = jax.random.split(key, 5)

    x = jax.random.normal(kx, (B, S, D), dtype=jnp.float32)

    # PyTorch defaults: gamma=1, beta=0; linears ~ small uniform.
    gamma = jnp.ones((D,), dtype=jnp.float32)
    beta = jnp.zeros((D,), dtype=jnp.float32)
    lim1 = 1.0 / (D ** 0.5)
    lim2 = 1.0 / (H ** 0.5)
    w1 = jax.random.uniform(k1, (D, H), minval=-lim1, maxval=lim1, dtype=jnp.float32)
    b1 = jax.random.uniform(kb1, (H,), minval=-lim1, maxval=lim1, dtype=jnp.float32)
    w2 = jax.random.uniform(k2, (H, D), minval=-lim2, maxval=lim2, dtype=jnp.float32)
    b2 = jax.random.uniform(kb2, (D,), minval=-lim2, maxval=lim2, dtype=jnp.float32)

    mlp = make_token_mlp(gamma, beta, w1, b1, w2, b2)
    out = jax.block_until_ready(mlp(x))

    ref = reference_token_mlp(x, gamma, beta, w1, b1, w2, b2)
    assert out.shape == (B, S, D)
    # bf16 MXU operands -> slightly looser tolerance than the pure-f32 reference.
    assert jnp.allclose(out, ref, atol=5e-2, rtol=5e-2), "mismatch vs reference"

    print("KERNEL_OK")
</pallas_src>

<mosaic_0001>
module attributes {stable_mosaic.version = 11 : i64} {
  func.func @kernel(%arg0: i32, %arg1: memref<16x128xf32, #tpu.memory_space<vmem>>, %arg2: memref<1x128xf32, #tpu.memory_space<vmem>>, %arg3: memref<1x128xf32, #tpu.memory_space<vmem>>, %arg4: memref<128x128xbf16, #tpu.memory_space<vmem>>, %arg5: memref<1x128xf32, #tpu.memory_space<vmem>>, %arg6: memref<128x128xbf16, #tpu.memory_space<vmem>>, %arg7: memref<1x128xf32, #tpu.memory_space<vmem>>, %arg8: memref<16x128xf32, #tpu.memory_space<vmem>>) attributes {dimension_semantics = [#tpu.dimension_semantics<parallel>], iteration_bounds = array<i64: 1>, scalar_prefetch = 0 : i64, scratch_operands = 0 : i64, tpu.core_type = #tpu.core_type<tc>, window_params = [{transform_indices = @transform_0, window_bounds = array<i64: 16, 128>}, {pipeline_mode = #tpu.pipeline_mode<synchronous>, transform_indices = @transform_1, window_bounds = array<i64: 1, 128>}, {pipeline_mode = #tpu.pipeline_mode<synchronous>, transform_indices = @transform_2, window_bounds = array<i64: 1, 128>}, {pipeline_mode = #tpu.pipeline_mode<synchronous>, transform_indices = @transform_3, window_bounds = array<i64: 128, 128>}, {pipeline_mode = #tpu.pipeline_mode<synchronous>, transform_indices = @transform_4, window_bounds = array<i64: 1, 128>}, {pipeline_mode = #tpu.pipeline_mode<synchronous>, transform_indices = @transform_5, window_bounds = array<i64: 128, 128>}, {pipeline_mode = #tpu.pipeline_mode<synchronous>, transform_indices = @transform_6, window_bounds = array<i64: 1, 128>}, {transform_indices = @transform_7, window_bounds = array<i64: 16, 128>}]} {
    %c0 = arith.constant 0 : index
    %c0_0 = arith.constant 0 : index
    %0 = vector.load %arg1[%c0, %c0_0] : memref<16x128xf32, #tpu.memory_space<vmem>>, vector<16x128xf32>
    %c0_1 = arith.constant 0 : index
    %c0_2 = arith.constant 0 : index
    %1 = vector.load %arg2[%c0_1, %c0_2] : memref<1x128xf32, #tpu.memory_space<vmem>>, vector<1x128xf32>
    %c0_3 = arith.constant 0 : index
    %c0_4 = arith.constant 0 : index
    %2 = vector.load %arg3[%c0_3, %c0_4] : memref<1x128xf32, #tpu.memory_space<vmem>>, vector<1x128xf32>
    %cst = arith.constant dense<0.000000e+00> : vector<16xf32>
    %3 = vector.multi_reduction <add>, %0, %cst [1] : vector<16x128xf32> to vector<16xf32>
    %4 = vector.shape_cast %3 : vector<16xf32> to vector<16x1xf32>
    %cst_5 = arith.constant 3.125000e-02 : f32
    %5 = vector.broadcast %cst_5 : f32 to vector<16x1xf32>
    %6 = arith.mulf %4, %5 : vector<16x1xf32>
    %7 = vector.broadcast %6 : vector<16x1xf32> to vector<16x128xf32>
    %8 = arith.subf %0, %7 : vector<16x128xf32>
    %9 = tpu.iota {dimensions = array<i32: 1>} : vector<16x128xi32>
    %c32_i32 = arith.constant 32 : i32
    %10 = vector.broadcast %c32_i32 : i32 to vector<16x128xi32>
    %11 = arith.cmpi slt, %9, %10 : vector<16x128xi32>
    %cst_6 = arith.constant 0.000000e+00 : f32
    %12 = vector.broadcast %cst_6 : f32 to vector<16x128xf32>
    %13 = arith.select %11, %8, %12 : vector<16x128xi1>, vector<16x128xf32>
    %14 = arith.mulf %13, %13 : vector<16x128xf32>
    %cst_7 = arith.constant dense<0.000000e+00> : vector<16xf32>
    %15 = vector.multi_reduction <add>, %14, %cst_7 [1] : vector<16x128xf32> to vector<16xf32>
    %16 = vector.shape_cast %15 : vector<16xf32> to vector<16x1xf32>
    %cst_8 = arith.constant 3.125000e-02 : f32
    %17 = vector.broadcast %cst_8 : f32 to vector<16x1xf32>
    %18 = arith.mulf %16, %17 : vector<16x1xf32>
    %cst_9 = arith.constant 9.99999974E-6 : f32
    %19 = vector.broadcast %cst_9 : f32 to vector<16x1xf32>
    %20 = arith.addf %18, %19 : vector<16x1xf32>
    %21 = math.rsqrt %20 : vector<16x1xf32>
    %22 = vector.broadcast %21 : vector<16x1xf32> to vector<16x128xf32>
    %23 = arith.mulf %8, %22 : vector<16x128xf32>
    %24 = vector.broadcast %1 : vector<1x128xf32> to vector<16x128xf32>
    %25 = arith.mulf %23, %24 : vector<16x128xf32>
    %26 = vector.broadcast %2 : vector<1x128xf32> to vector<16x128xf32>
    %27 = arith.addf %25, %26 : vector<16x128xf32>
    %28 = arith.truncf %27 : vector<16x128xf32> to vector<16x128xbf16>
    %c0_10 = arith.constant 0 : index
    %c0_11 = arith.constant 0 : index
    %29 = vector.load %arg4[%c0_10, %c0_11] : memref<128x128xbf16, #tpu.memory_space<vmem>>, vector<128x128xbf16>
    %cst_12 = arith.constant dense<0.000000e+00> : vector<16x128xf32>
    %30 = tpu.matmul %28, %29, %cst_12 {dimension_numbers = #tpu.dot_dimension_numbers<[1], [0], [0], [1], [0, 0, 1, 1], [], []>} : vector<16x128xbf16>, vector<128x128xbf16>, vector<16x128xf32> -> vector<16x128xf32>
    %c0_13 = arith.constant 0 : index
    %c0_14 = arith.constant 0 : index
    %31 = vector.load %arg5[%c0_13, %c0_14] : memref<1x128xf32, #tpu.memory_space<vmem>>, vector<1x128xf32>
    %32 = vector.broadcast %31 : vector<1x128xf32> to vector<16x128xf32>
    %33 = arith.addf %30, %32 : vector<16x128xf32>
    %cst_15 = arith.constant 0.000000e+00 : f32
    %34 = vector.broadcast %cst_15 : f32 to vector<16x128xf32>
    %35 = arith.maximumf %33, %34 : vector<16x128xf32>
    %36 = arith.truncf %35 : vector<16x128xf32> to vector<16x128xbf16>
    %c0_16 = arith.constant 0 : index
    %c0_17 = arith.constant 0 : index
    %37 = vector.load %arg6[%c0_16, %c0_17] : memref<128x128xbf16, #tpu.memory_space<vmem>>, vector<128x128xbf16>
    %cst_18 = arith.constant dense<0.000000e+00> : vector<16x128xf32>
    %38 = tpu.matmul %36, %37, %cst_18 {dimension_numbers = #tpu.dot_dimension_numbers<[1], [0], [0], [1], [0, 0, 1, 1], [], []>} : vector<16x128xbf16>, vector<128x128xbf16>, vector<16x128xf32> -> vector<16x128xf32>
    %c0_19 = arith.constant 0 : index
    %c0_20 = arith.constant 0 : index
    %39 = vector.load %arg7[%c0_19, %c0_20] : memref<1x128xf32, #tpu.memory_space<vmem>>, vector<1x128xf32>
    %40 = vector.broadcast %39 : vector<1x128xf32> to vector<16x128xf32>
    %41 = arith.addf %38, %40 : vector<16x128xf32>
    %42 = arith.addf %41, %0 : vector<16x128xf32>
    %c0_21 = arith.constant 0 : index
    %c0_22 = arith.constant 0 : index
    %43 = vector.load %arg8[%c0_21, %c0_22] : memref<16x128xf32, #tpu.memory_space<vmem>>, vector<16x128xf32>
    tpu.vector_store %arg8[%c0_21, %c0_22], %42 {strides = array<i32>} : memref<16x128xf32, #tpu.memory_space<vmem>>, vector<16x128xf32>,
    return
  }
  func.func @transform_0(%arg0: i32) -> (i32, i32) {
    %c0_i32 = arith.constant 0 : i32
    %c0_i32_0 = arith.constant 0 : i32
    return %arg0, %c0_i32 : i32, i32
  }
  func.func @transform_1(%arg0: i32) -> (i32, i32) {
    %c0_i32 = arith.constant 0 : i32
    %c0_i32_0 = arith.constant 0 : i32
    %c0_i32_1 = arith.constant 0 : i32
    return %c0_i32, %c0_i32_0 : i32, i32
  }
  func.func @transform_2(%arg0: i32) -> (i32, i32) {
    %c0_i32 = arith.constant 0 : i32
    %c0_i32_0 = arith.constant 0 : i32
    %c0_i32_1 = arith.constant 0 : i32
    return %c0_i32, %c0_i32_0 : i32, i32
  }
  func.func @transform_3(%arg0: i32) -> (i32, i32) {
    %c0_i32 = arith.constant 0 : i32
    %c0_i32_0 = arith.constant 0 : i32
    %c0_i32_1 = arith.constant 0 : i32
    return %c0_i32, %c0_i32_0 : i32, i32
  }
  func.func @transform_4(%arg0: i32) -> (i32, i32) {
    %c0_i32 = arith.constant 0 : i32
    %c0_i32_0 = arith.constant 0 : i32
    %c0_i32_1 = arith.constant 0 : i32
    return %c0_i32, %c0_i32_0 : i32, i32
  }
  func.func @transform_5(%arg0: i32) -> (i32, i32) {
    %c0_i32 = arith.constant 0 : i32
    %c0_i32_0 = arith.constant 0 : i32
    %c0_i32_1 = arith.constant 0 : i32
    return %c0_i32, %c0_i32_0 : i32, i32
  }
  func.func @transform_6(%arg0: i32) -> (i32, i32) {
    %c0_i32 = arith.constant 0 : i32
    %c0_i32_0 = arith.constant 0 : i32
    %c0_i32_1 = arith.constant 0 : i32
    return %c0_i32, %c0_i32_0 : i32, i32
  }
  func.func @transform_7(%arg0: i32) -> (i32, i32) {
    %c0_i32 = arith.constant 0 : i32
    %c0_i32_0 = arith.constant 0 : i32
    return %arg0, %c0_i32 : i32, i32
  }
}

</mosaic_0001>

<bundles_post_ra>
// kernel: apply.1
= control target key start
LH: loop header
LB: loop body
LE: loop exit
PB: predicated region body
PF: predicated region fallthrough
CT: control target
= control target key end

     0   :  { %12 = vsyncpa [#allocation3], 0  ;;  %s523_s0 = inlined_call_operand.vmem [shape: f32[16,128], index: 0, kind: input, shape index: {}]   ;;  %s524_s1 = inlined_call_operand.vmem [shape: f32[1,128], index: 1, kind: input, shape index: {}]   ;;  %s525_s2 = inlined_call_operand.vmem [shape: f32[1,128], index: 2, kind: input, shape index: {}]   ;;  %s526_s3 = inlined_call_operand.hbm [shape: bf16[128,128], index: 3, kind: input, shape index: {}]   ;;  %s527_s4 = inlined_call_operand.vmem [shape: f32[1,128], index: 4, kind: input, shape index: {}]   ;;  %s528_s5 = inlined_call_operand.hbm [shape: bf16[128,128], index: 5, kind: input, shape index: {}]   ;;  %s529_s6 = inlined_call_operand.vmem [shape: f32[1,128], index: 6, kind: input, shape index: {}]   ;;  %s530_s7 = inlined_call_operand.vmem [shape: f32[16,128], index: 7, kind: output, shape index: {}]  }
   0x1   :  { %s24_s26 = sshll.u32 %s526_s3, 4  ;;  %s25_s26 = int_to_ptr.hbm [resolvable:$true] %s24_s26 }
   0x2   :  { %13 = vsyncpa [#allocation5], 0  ;;  %s439_s27 = smov [#allocation2]   ;;  %s39_s8 = sshll.u32 %s528_s5, 4  ;;  %s40_s8 = int_to_ptr.hbm [resolvable:$true] %s39_s8 }
   0x3   :  { %s26_s28 = sshll.u32 %s439_s27, 4  ;;  %s440_s9 = smov 64   ;;  %s27_s28 = int_to_ptr.vmem [resolvable:$true] %s26_s28 }
   0x4   :  { %s441_s10 = smov 4   ;;  %s442_s11 = smov [#allocation4]  }
   0x5   :  { %32 = dma.hbm_to_vmem [thread:$0]  %s25_s26, 1024, %s27_s28, [#allocation3], %s440_s9, %s440_s9, %s441_s10  }
   0x6   :  { %s41_s12 = sshll.u32 %s442_s11, 4  ;;  %s42_s12 = int_to_ptr.vmem [resolvable:$true] %s41_s12 }
   0x7   :  { %47 = dma.hbm_to_vmem [thread:$0]  %s40_s8, 1024, %s42_s12, [#allocation5], %s440_s9, %s440_s9, %s441_s10  }
   0x8   :  { %435 = dma.done.wait [#allocation3], 1024  }
   0x9   :  { %436 = vsyncadd [#allocation3], 4294966272 }
   0xa   :  { %437 = dma.done.wait [#allocation5], 1024  }
   0xb   :  { %438 = vsyncadd [#allocation5], 4294966272  ;;  %v492_v0 = vld [vmem:[%s523_s0] sm:$0xff]  ;;  %v498_v1 = vld [vmem:[%s523_s0 + $0x8] sm:$0xff]  ;;  %v70_v2 = vlaneseq }
   0xc   :  { %62 = vadd.xlane.f32.xlu0 %v492_v0  ;;  %v366_v14 = vld [vmem:[#allocation2 + $0x38] sm:$0xff]  ;;  %v365_v15 = vld [vmem:[#allocation2 + $0x30] sm:$0xff]  ;;  %v364_v16 = vld [vmem:[#allocation2 + $0x28] sm:$0xff] }
   0xd   :  { %v71_v3 = vand.u32 127, %v70_v2  ;;  %186 = vmatpush.bf16.msra.mxu0 %v366_v14  ;;  %v363_v17 = vld [vmem:[#allocation2 + $0x20] sm:$0xff]  ;;  %v362_v18 = vld [vmem:[#allocation2 + $0x18] sm:$0xff]  ;;  %v361_v19 = vld [vmem:[#allocation2 + $0x10] sm:$0xff] }
   0xe   :  { %v360_v20 = vld [vmem:[#allocation2 + $0x8] sm:$0xff]  ;;  %v359_v22 = vld [vmem:[#allocation2] sm:$0xff]  ;;  %v374_v25 = vld [vmem:[#allocation4 + $0x38] sm:$0xff] }
   0xf   :  { %vm72_vm0 = vcmp.lt.s32.totalorder %v71_v3, 32  ;;  %271 = vmatpush.bf16.msra.mxu1 %v374_v25  ;;  %v373_v28 = vld [vmem:[#allocation4 + $0x30] sm:$0xff]  ;;  %v372_v32 = vld [vmem:[#allocation4 + $0x28] sm:$0xff]  ;;  %v371_v35 = vld [vmem:[#allocation4 + $0x20] sm:$0xff] }
  0x10   :  { %v379_v45 = vld [vmem:[%s524_s1] ss:$0 sm:$0xff]  ;;  %v370_v55 = vld [vmem:[#allocation4 + $0x18] sm:$0xff]  ;;  %v369_v56 = vld [vmem:[#allocation4 + $0x10] sm:$0xff] }
  0x11   :  { %187 = vmatpush.bf16.msra.mxu0 %v365_v15  ;;  %v380_v50 = vld [vmem:[%s525_s2] ss:$0 sm:$0xff]  ;;  %v368_v57 = vld [vmem:[#allocation4 + $0x8] sm:$0xff] }
  0x12   :  { %v367_v58 = vld [vmem:[#allocation4] sm:$0xff] }
  0x13   :  { %272 = vmatpush.bf16.msra.mxu1 %v373_v28  ;;  %v381_v60 = vld [vmem:[%s527_s4] ss:$0 sm:$0xff] }
  0x14   :  { %64 = vadd.xlane.f32.xlu0 %v498_v1 }
  0x15   :  { %188 = vmatpush.bf16.msra.mxu0 %v364_v16 }
  0x17   :  { %273 = vmatpush.bf16.msra.mxu1 %v372_v32 }
  0x19   :  { %189 = vmatpush.bf16.msra.mxu0 %v363_v17 }
  0x1b   :  { %274 = vmatpush.bf16.msra.mxu1 %v371_v35 }
  0x1d   :  { %190 = vmatpush.bf16.msra.mxu0 %v362_v18 }
  0x1f   :  { %275 = vmatpush.bf16.msra.mxu1 %v370_v55 }
  0x21   :  { %191 = vmatpush.bf16.msra.mxu0 %v361_v19 }
  0x23   :  { %276 = vmatpush.bf16.msra.mxu1 %v369_v56 }
  0x25   :  { %192 = vmatpush.bf16.msra.mxu0 %v360_v20 }
  0x27   :  { %277 = vmatpush.bf16.msra.mxu1 %v368_v57 }
  0x29   :  { %193 = vmatpush.bf16.msra.mxu0 %v359_v22 }
  0x2b   :  { %278 = vmatpush.bf16.msra.mxu1 %v367_v58 }
  0x7f   :  { %v63_v4 = vpop.xlane.xlu0 %62 }
  0x80   :  { %v66_v5 = vmul.f32 0.03125, %v63_v4 }
  0x82   :  { %v68_v6 = vsub.f32 %v492_v0, %v66_v5  ;;  %v382_v5 = vld [vmem:[%s529_s6] ss:$0 sm:$0xff] }
  0x84   :  { %v73_v7 = vsel %vm72_vm0, %v68_v6, 0.0 }
  0x85   :  { %v75_v8 = vmul.f32 %v73_v7, %v73_v7 }
  0x87   :  { %77 = vadd.xlane.f32.xlu1 %v75_v8  ;;  %v65_v9 = vpop.xlane.xlu0 %64 }
  0x88   :  { %v67_v10 = vmul.f32 0.03125, %v65_v9 }
  0x8a   :  { %v69_v11 = vsub.f32 %v498_v1, %v67_v10 }
  0x8c   :  { %v74_v12 = vsel %vm72_vm0, %v69_v11, 0.0 }
  0x8d   :  { %v76_v13 = vmul.f32 %v74_v12, %v74_v12 }
  0x8f   :  { %79 = vadd.xlane.f32.xlu1 %v76_v13 }
  0xfa   :  { %v78_v21 = vpop.xlane.xlu1 %77 }
  0xfb   :  { %v81_v23 = vmul.f32 0.03125, %v78_v21 }
  0xfd   :  { %v83_v24 = vadd.f32 1e-05, %v81_v23 }
  0xff   :  { %383 = vrsqrt.f32 %v83_v24  ;;  %vm91_vm2 = vweird.f32 %v83_v24 }
 0x102   :  { %v80_v26 = vpop.xlane.xlu1 %79 }
 0x103   :  { %v82_v27 = vmul.f32 0.03125, %v80_v26 }
 0x105   :  { %v384_v29 = vpop.eup %383  ;;  %v84_v30 = vadd.f32 1e-05, %v82_v27 }
 0x106   :  { %v86_v31 = vmul.f32 %v384_v29, %v83_v24  ;;  %vm92_vm1 = vweird.f32 %v384_v29 }
 0x107   :  { %385 = vrsqrt.f32 %v84_v30  ;;  %vm93_vm3 = vmor %vm91_vm2, %vm92_vm1  ;;  %vm101_vm5 = vweird.f32 %v84_v30 }
 0x108   :  { %v87_v33 = vmul.f32 %v384_v29, %v86_v31 }
 0x10a   :  { %v88_v34 = vmul.f32 0.5, %v87_v33 }
 0x10c   :  { %v89_v36 = vsub.f32 1.5, %v88_v34 }
 0x10d   :  { %v386_v37 = vpop.eup %385 }
 0x10e   :  { %v90_v38 = vmul.f32 %v384_v29, %v89_v36  ;;  %v96_v39 = vmul.f32 %v386_v37, %v84_v30  ;;  %vm102_vm4 = vweird.f32 %v386_v37 }
 0x10f   :  { %vm103_vm6 = vmor %vm101_vm5, %vm102_vm4 }
 0x110   :  { %v97_v40 = vmul.f32 %v386_v37, %v96_v39  ;;  %v94_v42 = vsel %vm93_vm3, %v384_v29, %v90_v38 }
 0x111   :  { %v105_v44 = vmul.f32 %v94_v42, %v68_v6 }
 0x112   :  { %v98_v41 = vmul.f32 0.5, %v97_v40 }
 0x113   :  { %v110_v49 = vmul.f32 %v379_v45, %v105_v44 }
 0x114   :  { %v99_v43 = vsub.f32 1.5, %v98_v41 }
 0x115   :  { %v115_v52 = vadd.f32 %v380_v50, %v110_v49 }
 0x116   :  { %v100_v46 = vmul.f32 %v386_v37, %v99_v43 }
 0x118   :  { %v104_v47 = vsel %vm103_vm6, %v386_v37, %v100_v46 }
 0x119   :  { %v106_v48 = vmul.f32 %v104_v47, %v69_v11 }
 0x11b   :  { %v111_v51 = vmul.f32 %v379_v45, %v106_v48 }
 0x11d   :  { %v116_v53 = vadd.f32 %v380_v50, %v111_v51 }
 0x11f   :  { %v117_v54 = vpack.c.bf16 %v116_v53, %v115_v52 }
 0x121   :  { %194 = vmatmul.bf16.vlgmr.msra.gmra.mxu0 %v117_v54 }
 0x19e   :  { %v195_v59 = vpop.f32.mrf.mxu0 }
 0x19f   :  { %v196_v61 = vadd.f32 %v381_v60, %v195_v59 }
 0x1a1   :  { %v200_v2 = vmax.f32 %v196_v61, 0.0 }
 0x1a6   :  { %v197_v62 = vpop.f32.mrf.mxu0 }
 0x1a7   :  { %v198_v63 = vadd.f32 %v381_v60, %v197_v62 }
 0x1a9   :  { %v201_v3 = vmax.f32 %v198_v63, 0.0 }
 0x1ab   :  { %v202_v4 = vpack.c.bf16 %v201_v3, %v200_v2 }
 0x1ad   :  { %279 = vmatmul.bf16.vlgmr.msra.gmra.mxu1 %v202_v4 }
 0x22a   :  { %v280_v6 = vpop.f32.mrf.mxu1 }
 0x22b   :  { %v281_v7 = vadd.f32 %v382_v5, %v280_v6 }
 0x22d   :  { %v285_v8 = vadd.f32 %v281_v7, %v492_v0 }
 0x22f   :  { %287 = vst [vmem:[%s530_s7] sm:$0xff] %v285_v8 }
 0x232   :  { %v282_v9 = vpop.f32.mrf.mxu1 }
 0x233   :  { %v283_v10 = vadd.f32 %v382_v5, %v282_v9 }
 0x235   :  { %v286_v11 = vadd.f32 %v283_v10, %v498_v1 }
 0x237   :  { %288 = vst [vmem:[%s530_s7 + $0x8] sm:$0xff] %v286_v11 }
 0x238   :  { %293 = vsyncpa [#allocation3], 1 }
 0x239   :  { %294 = vsyncpa [#allocation5], 1 }

</bundles_post_ra>
